<compile_context>
chip_gen: v6e
topology: v6e:2x2x1
jax: 0.10.0
libtpu: 0.0.40
codegen_flags: <defaults>
</compile_context>

<pallas_src>
import jax
import jax.numpy as jnp
from jax import lax
from jax.experimental import pallas as pl
from jax.experimental.pallas import tpu as pltpu


def _round_up(x, m):
    return (x + m - 1) // m * m


def _choose_row_tile(H, W, Cin, C4p, itemsize):
    """Pick the row-tile height TH (a divisor of H).

    Sized against v7x's 64 MiB VMEM per TensorCore: double-buffered input and
    output blocks plus the in-kernel im2col LHS / f32 matmul result must fit
    with headroom.  Prefers >=2 row tiles per image (pipeline depth) and an
    MXU M dim (TH*W) that is a multiple of 256 when possible.
    """
    budget = int(0.55 * (64 * 1024 * 1024))
    wc_bytes = 9 * Cin * C4p * itemsize

    def fits(th):
        in_b = (th + 2) * (W + 2) * Cin * itemsize      # body + halo rows
        out_b = th * W * C4p * itemsize                 # conv output block
        lhs_b = th * W * 9 * Cin * itemsize             # im2col LHS temporary
        acc_b = th * W * C4p * 4                        # f32 matmul result
        return 2 * (in_b + out_b) + lhs_b + acc_b + wc_bytes <= budget

    divisors = [t for t in range(H, 0, -1) if H % t == 0]
    cands = [t for t in divisors if t <= H // 2] or divisors   # >=2 row tiles
    for th in cands:                      # prefer M = TH*W multiple of 256
        if (th * W) % 256 == 0 and fits(th):
            return th
    for th in cands:
        if fits(th):
            return th
    return cands[-1]


def _upsample_conv_kernel(xb_ref, xh0_ref, xh1_ref, wc_ref, o_ref):
    """Fused depthwise-3x3 + pointwise-1x1 conv for one (batch, row-tile) block.

    xb_ref  : (1, TH, W+2, Cin)  body rows of the zero-padded NHWC input
    xh0_ref : (1, 1,  W+2, Cin)  halo row (h+1)*TH   of the padded input
    xh1_ref : (1, 1,  W+2, Cin)  halo row (h+1)*TH+1 of the padded input
    wc_ref  : (9*Cin, C4p)       combined im2col weight
                                 wc[(3*dh+dw)*Cin + c, c'] = w_dw[c,dh,dw]*w_pw[c',c]
                                 (output channels zero-padded to C4p % 128 == 0)
    o_ref   : (1, TH, W, C4p)    conv output tile (before pixel shuffle)
    """
    TH = o_ref.shape[1]
    W = o_ref.shape[2]
    Cin = xb_ref.shape[3]
    C4p = o_ref.shape[3]

    # (TH+2, W+2, Cin) window = body rows ++ 2 halo rows.
    win = jnp.concatenate([xb_ref[0], xh0_ref[0], xh1_ref[0]], axis=0)

    # im2col: one (TH*W, 9*Cin) LHS, then a SINGLE MXU matmul with K = 9*Cin
    # and f32 accumulation (replaces 9 tiny-K matmuls + 8 full-size VPU adds).
    taps = [win[dh:dh + TH, dw:dw + W, :] for dh in range(3) for dw in range(3)]
    lhs = jnp.concatenate(taps, axis=-1).reshape(TH * W, 9 * Cin)
    acc = jnp.dot(lhs, wc_ref[...], preferred_element_type=jnp.float32)

    # Lane-dense store: last dim C4p is a multiple of 128 -> unmasked vst.
    o_ref[...] = acc.reshape(1, TH, W, C4p).astype(o_ref.dtype)


def upsample_forward(x_nchw, w_dw, w_pw, out_feat):
    """Forward pass matching the PyTorch module.

    x_nchw : (B, Cin, H, W)
    w_dw   : (Cin, 1, 3, 3)          depthwise conv weight (PyTorch layout)
    w_pw   : (4*out_feat, Cin, 1, 1) pointwise conv weight (PyTorch layout)
    returns: (B, out_feat, 2H, 2W)
    """
    B, Cin, H, W = x_nchw.shape
    C4 = 4 * out_feat
    C4p = _round_up(C4, 128)   # lane-dense / MXU-native output channel count
    itemsize = jnp.dtype(x_nchw.dtype).itemsize
    TH = _choose_row_tile(H, W, Cin, C4p, itemsize)
    nH = H // TH

    # ---- combined im2col weight (tiny; built once in XLA) ----
    wdw = jnp.transpose(w_dw[:, 0, :, :], (1, 2, 0)).astype(jnp.float32)   # (3,3,Cin)
    wpw = jnp.transpose(w_pw[:, :, 0, 0], (1, 0)).astype(jnp.float32)      # (Cin,C4)
    wc = wdw[:, :, :, None] * wpw[None, None, :, :]                        # (3,3,Cin,C4)
    wc = jnp.pad(wc, ((0, 0), (0, 0), (0, 0), (0, C4p - C4)))              # lane-pad c'
    wc = wc.reshape(9 * Cin, C4p).astype(x_nchw.dtype)

    # ---- layout glue: NCHW -> NHWC + spatial zero pad (single XLA pass) ----
    # TODO(synk): fuse the 1-pixel zero border into the kernel via @pl.when
    # edge masking on boundary tiles to remove this extra HBM pass.
    x_nhwc = jnp.transpose(x_nchw, (0, 2, 3, 1))                 # (B,H,W,Cin)
    x_pad = jnp.pad(x_nhwc, ((0, 0), (1, 1), (1, 1), (0, 0)))    # (B,H+2,W+2,Cin)

    conv = pl.pallas_call(
        _upsample_conv_kernel,
        out_shape=jax.ShapeDtypeStruct((B, H, W, C4p), x_nchw.dtype),
        grid_spec=pltpu.PrefetchScalarGridSpec(
            num_scalar_prefetch=0,
            grid=(B, nH),
            in_specs=[
                # Body rows [h*TH, h*TH + TH) of the padded input.
                pl.BlockSpec((1, TH, W + 2, Cin), lambda b, h: (b, h, 0, 0)),
                # +2-row halo, fetched as two single-row blocks so adjacent
                # row tiles can overlap with plain Blocked indexing.
                pl.BlockSpec((1, 1, W + 2, Cin),
                             lambda b, h: (b, (h + 1) * TH, 0, 0)),
                pl.BlockSpec((1, 1, W + 2, Cin),
                             lambda b, h: (b, (h + 1) * TH + 1, 0, 0)),
                # Combined weight, resident in VMEM across the whole grid.
                pl.BlockSpec((9 * Cin, C4p), lambda b, h: (0, 0)),
            ],
            out_specs=pl.BlockSpec((1, TH, W, C4p), lambda b, h: (b, h, 0, 0)),
        ),
        compiler_params=pltpu.CompilerParams(
            dimension_semantics=("parallel", "parallel"),
            vmem_limit_bytes=56 * 1024 * 1024),
    )(x_pad, x_pad, x_pad, wc)

    # ---- PixelShuffle(2) + NHWC->NCHW as ONE composed permutation pass ----
    # out[b, co, 2h+i, 2w+j] = conv[b, h, w, co*4 + i*2 + j]
    y = conv[..., :C4].reshape(B, H, W, out_feat, 2, 2)
    y = jnp.transpose(y, (0, 3, 1, 4, 2, 5))                     # (B,Cout,H,2,W,2)
    return y.reshape(B, out_feat, 2 * H, 2 * W)


def upsample_reference(x_nchw, w_dw, w_pw, out_feat):
    """Pure-JAX reference (two lax.convs + pixel shuffle), unfused."""
    B, Cin, H, W = x_nchw.shape
    x_nhwc = jnp.transpose(x_nchw, (0, 2, 3, 1))
    k_dw = jnp.transpose(w_dw, (2, 3, 1, 0))                     # (3,3,1,Cin)
    y = lax.conv_general_dilated(
        x_nhwc, k_dw, window_strides=(1, 1), padding=((1, 1), (1, 1)),
        dimension_numbers=("NHWC", "HWIO", "NHWC"),
        feature_group_count=Cin)
    k_pw = jnp.transpose(w_pw, (2, 3, 1, 0))                     # (1,1,Cin,4*Cout)
    y = lax.conv_general_dilated(
        y, k_pw, window_strides=(1, 1), padding=((0, 0), (0, 0)),
        dimension_numbers=("NHWC", "HWIO", "NHWC"))
    y = y.reshape(B, H, W, out_feat, 2, 2)
    y = jnp.transpose(y, (0, 1, 4, 2, 5, 3)).reshape(B, 2 * H, 2 * W, out_feat)
    return jnp.transpose(y, (0, 3, 1, 2))


if __name__ == "__main__":
    key = jax.random.PRNGKey(0)
    k_x, k_dw, k_pw = jax.random.split(key, 3)

    B, Cin, H, W = 2, 4, 16, 16
    out_feat = 8

    x = jax.random.normal(k_x, (B, Cin, H, W), jnp.float32)
    w_dw = jax.random.normal(k_dw, (Cin, 1, 3, 3), jnp.float32) * 0.1
    w_pw = jax.random.normal(k_pw, (4 * out_feat, Cin, 1, 1), jnp.float32) * 0.1

    fwd = jax.jit(upsample_forward, static_argnums=(3,))
    out = jax.block_until_ready(fwd(x, w_dw, w_pw, out_feat))
    ref = jax.block_until_ready(upsample_reference(x, w_dw, w_pw, out_feat))

    assert out.shape == (B, out_feat, 2 * H, 2 * W), out.shape
    assert jnp.allclose(out, ref, atol=1e-4, rtol=1e-4), \
        float(jnp.max(jnp.abs(out - ref)))

    print("KERNEL_OK")
</pallas_src>

<mosaic_0001>
module attributes {stable_mosaic.version = 11 : i64} {
  func.func @_upsample_conv_kernel(%arg0: i32, %arg1: i32, %arg2: memref<1x8x18x4xf32, #tpu.memory_space<vmem>>, %arg3: memref<1x1x18x4xf32, #tpu.memory_space<vmem>>, %arg4: memref<1x1x18x4xf32, #tpu.memory_space<vmem>>, %arg5: memref<36x128xf32, #tpu.memory_space<vmem>>, %arg6: memref<1x8x16x128xf32, #tpu.memory_space<vmem>>) attributes {dimension_semantics = [#tpu.dimension_semantics<parallel>, #tpu.dimension_semantics<parallel>], iteration_bounds = array<i64: 2, 2>, scalar_prefetch = 0 : i64, scratch_operands = 0 : i64, tpu.core_type = #tpu.core_type<tc>, window_params = [{transform_indices = @transform_0, window_bounds = array<i64: 1, 8, 18, 4>}, {transform_indices = @transform_1, window_bounds = array<i64: 1, 1, 18, 4>}, {transform_indices = @transform_2, window_bounds = array<i64: 1, 1, 18, 4>}, {pipeline_mode = #tpu.pipeline_mode<synchronous>, transform_indices = @transform_3, window_bounds = array<i64: 36, 128>}, {transform_indices = @transform_4, window_bounds = array<i64: 1, 8, 16, 128>}]} {
    %c0 = arith.constant 0 : index
    %c0_0 = arith.constant 0 : index
    %c0_1 = arith.constant 0 : index
    %c0_2 = arith.constant 0 : index
    %0 = vector.load %arg2[%c0, %c0_0, %c0_1, %c0_2] : memref<1x8x18x4xf32, #tpu.memory_space<vmem>>, vector<1x8x18x4xf32>
    %1 = vector.shape_cast %0 : vector<1x8x18x4xf32> to vector<8x18x4xf32>
    %c0_3 = arith.constant 0 : index
    %c0_4 = arith.constant 0 : index
    %c0_5 = arith.constant 0 : index
    %c0_6 = arith.constant 0 : index
    %2 = vector.load %arg3[%c0_3, %c0_4, %c0_5, %c0_6] : memref<1x1x18x4xf32, #tpu.memory_space<vmem>>, vector<1x1x18x4xf32>
    %3 = vector.shape_cast %2 : vector<1x1x18x4xf32> to vector<1x18x4xf32>
    %c0_7 = arith.constant 0 : index
    %c0_8 = arith.constant 0 : index
    %c0_9 = arith.constant 0 : index
    %c0_10 = arith.constant 0 : index
    %4 = vector.load %arg4[%c0_7, %c0_8, %c0_9, %c0_10] : memref<1x1x18x4xf32, #tpu.memory_space<vmem>>, vector<1x1x18x4xf32>
    %5 = vector.shape_cast %4 : vector<1x1x18x4xf32> to vector<1x18x4xf32>
    %6 = tpu.concatenate %1, %3, %5 in 0 : vector<8x18x4xf32>, vector<1x18x4xf32>, vector<1x18x4xf32> -> vector<10x18x4xf32>
    %7 = vector.extract_strided_slice %6 {offsets = [0, 0, 0], sizes = [8, 16, 4], strides = [1, 1, 1]} : vector<10x18x4xf32> to vector<8x16x4xf32>
    %8 = vector.extract_strided_slice %6 {offsets = [0, 1, 0], sizes = [8, 16, 4], strides = [1, 1, 1]} : vector<10x18x4xf32> to vector<8x16x4xf32>
    %9 = vector.extract_strided_slice %6 {offsets = [0, 2, 0], sizes = [8, 16, 4], strides = [1, 1, 1]} : vector<10x18x4xf32> to vector<8x16x4xf32>
    %10 = vector.extract_strided_slice %6 {offsets = [1, 0, 0], sizes = [8, 16, 4], strides = [1, 1, 1]} : vector<10x18x4xf32> to vector<8x16x4xf32>
    %11 = vector.extract_strided_slice %6 {offsets = [1, 1, 0], sizes = [8, 16, 4], strides = [1, 1, 1]} : vector<10x18x4xf32> to vector<8x16x4xf32>
    %12 = vector.extract_strided_slice %6 {offsets = [1, 2, 0], sizes = [8, 16, 4], strides = [1, 1, 1]} : vector<10x18x4xf32> to vector<8x16x4xf32>
    %13 = vector.extract_strided_slice %6 {offsets = [2, 0, 0], sizes = [8, 16, 4], strides = [1, 1, 1]} : vector<10x18x4xf32> to vector<8x16x4xf32>
    %14 = vector.extract_strided_slice %6 {offsets = [2, 1, 0], sizes = [8, 16, 4], strides = [1, 1, 1]} : vector<10x18x4xf32> to vector<8x16x4xf32>
    %15 = vector.extract_strided_slice %6 {offsets = [2, 2, 0], sizes = [8, 16, 4], strides = [1, 1, 1]} : vector<10x18x4xf32> to vector<8x16x4xf32>
    %16 = tpu.concatenate %7, %8, %9, %10, %11, %12, %13, %14, %15 in 2 : vector<8x16x4xf32>, vector<8x16x4xf32>, vector<8x16x4xf32>, vector<8x16x4xf32>, vector<8x16x4xf32>, vector<8x16x4xf32>, vector<8x16x4xf32>, vector<8x16x4xf32>, vector<8x16x4xf32> -> vector<8x16x36xf32>
    %17 = vector.shape_cast %16 : vector<8x16x36xf32> to vector<128x36xf32>
    %c0_11 = arith.constant 0 : index
    %c0_12 = arith.constant 0 : index
    %18 = vector.load %arg5[%c0_11, %c0_12] : memref<36x128xf32, #tpu.memory_space<vmem>>, vector<36x128xf32>
    %cst = arith.constant dense<0.000000e+00> : vector<128x128xf32>
    %19 = tpu.matmul %17, %18, %cst {dimension_numbers = #tpu.dot_dimension_numbers<[1], [0], [0], [1], [0, 0, 1, 1], [], []>} : vector<128x36xf32>, vector<36x128xf32>, vector<128x128xf32> -> vector<128x128xf32>
    %20 = vector.shape_cast %19 : vector<128x128xf32> to vector<1x8x16x128xf32>
    %c0_13 = arith.constant 0 : index
    %c0_14 = arith.constant 0 : index
    %c0_15 = arith.constant 0 : index
    %c0_16 = arith.constant 0 : index
    %21 = vector.load %arg6[%c0_13, %c0_14, %c0_15, %c0_16] : memref<1x8x16x128xf32, #tpu.memory_space<vmem>>, vector<1x8x16x128xf32>
    tpu.vector_store %arg6[%c0_13, %c0_14, %c0_15, %c0_16], %20 {strides = array<i32>} : memref<1x8x16x128xf32, #tpu.memory_space<vmem>>, vector<1x8x16x128xf32>,
    return
  }
  func.func @transform_0(%arg0: i32, %arg1: i32) -> (i32, i32, i32, i32) {
    %c0_i32 = arith.constant 0 : i32
    %c0_i32_0 = arith.constant 0 : i32
    %c0_i32_1 = arith.constant 0 : i32
    return %arg0, %arg1, %c0_i32, %c0_i32_0 : i32, i32, i32, i32
  }
  func.func @transform_1(%arg0: i32, %arg1: i32) -> (i32, i32, i32, i32) {
    %c1_i32 = arith.constant 1 : i32
    %0 = arith.addi %arg1, %c1_i32 : i32
    %c8_i32 = arith.constant 8 : i32
    %1 = arith.muli %0, %c8_i32 : i32
    %c0_i32 = arith.constant 0 : i32
    %c0_i32_0 = arith.constant 0 : i32
    %c0_i32_1 = arith.constant 0 : i32
    return %arg0, %1, %c0_i32, %c0_i32_0 : i32, i32, i32, i32
  }
  func.func @transform_2(%arg0: i32, %arg1: i32) -> (i32, i32, i32, i32) {
    %c1_i32 = arith.constant 1 : i32
    %0 = arith.addi %arg1, %c1_i32 : i32
    %c8_i32 = arith.constant 8 : i32
    %1 = arith.muli %0, %c8_i32 : i32
    %c1_i32_0 = arith.constant 1 : i32
    %2 = arith.addi %1, %c1_i32_0 : i32
    %c0_i32 = arith.constant 0 : i32
    %c0_i32_1 = arith.constant 0 : i32
    %c0_i32_2 = arith.constant 0 : i32
    return %arg0, %2, %c0_i32, %c0_i32_1 : i32, i32, i32, i32
  }
  func.func @transform_3(%arg0: i32, %arg1: i32) -> (i32, i32) {
    %c0_i32 = arith.constant 0 : i32
    %c0_i32_0 = arith.constant 0 : i32
    %c0_i32_1 = arith.constant 0 : i32
    return %c0_i32, %c0_i32_0 : i32, i32
  }
  func.func @transform_4(%arg0: i32, %arg1: i32) -> (i32, i32, i32, i32) {
    %c0_i32 = arith.constant 0 : i32
    %c0_i32_0 = arith.constant 0 : i32
    %c0_i32_1 = arith.constant 0 : i32
    return %arg0, %arg1, %c0_i32, %c0_i32_0 : i32, i32, i32, i32
  }
}

</mosaic_0001>

<bundles_post_ra>
// kernel: upsample_forward.1
= control target key start
LH: loop header
LB: loop body
LE: loop exit
PB: predicated region body
PF: predicated region fallthrough
CT: control target
= control target key end

     0   :  { %s1652_s15 = smov 0   ;;  %s1654_s16 = smov 0   ;;  %s2412_s0 = inlined_call_operand.vmem [shape: f32[2,18,18,4], index: 0, kind: input, shape index: {}, may-alias: {0,1,2}]   ;;  %s2413_s1 = inlined_call_operand.vmem [shape: f32[2,18,18,4], index: 1, kind: input, shape index: {}, may-alias: {0,1,2}]   ;;  %s2414_s2 = inlined_call_operand.vmem [shape: f32[2,18,18,4], index: 2, kind: input, shape index: {}, may-alias: {0,1,2}]   ;;  %s2415_s3 = inlined_call_operand.vmem [shape: f32[36,128], index: 3, kind: input, shape index: {}]   ;;  %s2416_s4 = inlined_call_operand.vmem [shape: f32[2,16,16,128], index: 4, kind: output, shape index: {}]  }
   0x1   :  { %s1656_s17 = smov 0   ;;  %s1658_s18 = smov 0  }
   0x2   :  { %s1660_s19 = smov 0  }
   0x3 LB: > { %s23_s20 = sadd.s32 1, %s1609_s17  ;;  %s26_s21 = sadd.s32 1, %s1613_s18  ;;  %s1617_s19 = sphi %s1660_s19, %s14_s19   ;;  %s1613_s18 = sphi %s1658_s18, %s2448_s18   ;;  %s1609_s17 = sphi %s1656_s17, %s2447_s17   ;;  %s1605_s16 = sphi %s1654_s16, %s2446_s16   ;;  %s1601_s15 = sphi %s1652_s15, %s2445_s15  }
   0x4   : > { %p24_p0 = scmp.ge.s32.totalorder %s23_s20, 2  ;;  %p1420_p1 = scmp.ge.s32.totalorder %s1617_s19, 1 }
   0x5   : > { %p246_p2 = scmp.lt.s32.totalorder %s1617_s19, 5 }
   0x6   : > { %s2450_s20 = smov (%p24_p0, %s23_s20), 0  ;;  %s2452_s21 = smov (!%p24_p0, %s26_s21), %s1613_s18 }
   0x7   : > { %p247_p3 = pnand %p1420_p1, %p246_p2  ;;  %p28_p4 = scmp.ge.s32.totalorder %s2452_s21, 2 }
   0x9   : > { %s2454_s21 = smov (%p28_p4, %s2452_s21), 0  ;;  %250 = sbr.rel (%p247_p3) target bundleno = 593 (0x251), region = 36 }
   0xe   : > { %s1682_s22 = sshll.u32 %s1601_s15, 3  ;;  %p316_p5 = scmp.lt.s32.totalorder %s1605_s16, 1  ;;  %vm424_vm0 = vcmask 1046528   ;;  %vm513_vm1 = vcmask 1045504   ;;  %vm1106_vm2 = vcmask 1043456   ;;  %vm916_vm3 = vcmask 31744  }
   0xf   : > { %p318_p6 = scmp.lt.s32.totalorder %s1682_s22, 17  ;;  %s1619_s5 = smov 4   ;;  %vm933_vm4 = vcmask 64512   ;;  %vm950_vm5 = vcmask 97280   ;;  %vm967_vm6 = vcmask 130048   ;;  %vm984_vm7 = vcmask 162816  }
  0x10   : > { %s2456_s16 = smov (!%p316_p5, %s1605_s16), 1  ;;  %s1620_s6 = smov 8   ;;  %vm1001_vm8 = vcmask 195584   ;;  %vm1018_vm9 = vcmask 228352   ;;  %vm1035_vm10 = vcmask 261120   ;;  %vm1057_vm11 = vcmask 293888  }
  0x11   : > { %s319_s23 = scalar_select %p318_p6, %s1682_s22, 17 }
  0x12   : > { %s1689_s24 = smul.u32 54, %s2456_s16  ;;  %s1621_s7 = smov 12  }
  0x13   : > { %s1527_s25 = smul.u32 3, %s319_s23  ;;  %s1622_s8 = smov 16  }
  0x14   : > { %s1623_s9 = smov 20   ;;  %s1624_s10 = smov 24  }
  0x15   : > { %s322_s26 = sadd.s32 %s1689_s24, %s1527_s25  ;;  %s1625_s11 = smov 28  }
  0x16   : > { %s1422_s27 = sshll.u32 %s322_s26, 3  ;;  %s1626_s28 = smov 32  }
  0x17   : > { %s1695_s30 = scalar_lea.vmem %s2412_s0, %s1422_s27  ;;  %p362_p9 = scmp.lt.s32.totalorder %s1682_s22, 15 }
  0x18   : > { %v1698_v0 = vld [vmem:[%s1695_s30 + $0x8] sm:$0xff]  ;;  %v372_v1 = vld [vmem:[%s1695_s30 + $0x10] sm:$0x3]  ;;  %v1702_v2 = vld [vmem:[%s1695_s30] sm:$0xff] }
  0x19   : > { %v426_v3 = vrot.slane %v1698_v0, 1  ;;  %v428_v4 = vrot.slane %v372_v1, 1  ;;  %v425_v5 = vrot.slane %v1702_v2, 1  ;;  %v1707_v6 = vld [vmem:[%s1695_s30 + $0x68] sm:$0xff]  ;;  %v384_v7 = vld [vmem:[%s1695_s30 + $0x70] sm:$0x3] }
  0x1a   : > { %v446_v8 = vrot.slane %v1707_v6, 1  ;;  %v448_v9 = vrot.slane %v384_v7, 1  ;;  %v1712_v10 = vld [vmem:[%s1695_s30 + $0x60] sm:$0xff]  ;;  %v535_v14 = vrot.slane %v1707_v6, 2  ;;  %v514_v15 = vrot.slane %v1702_v2, 2  ;;  %v1748_v26 = vld [vmem:[%s1695_s30 + $0x78] sm:$0xff] }
  0x1b   : > { %v429_v11 = vsel %vm424_vm0, %v426_v3, %v428_v4  ;;  %v427_v12 = vsel %vm424_vm0, %v425_v5, %v426_v3  ;;  %v445_v13 = vrot.slane %v1712_v10, 1  ;;  %v534_v18 = vrot.slane %v1712_v10, 2  ;;  %v1751_v27 = vld [vmem:[%s1695_s30 + $0x18] sm:$0xff]  ;;  %v1754_v28 = vld [vmem:[%s1695_s30 + $0x80] sm:$0xff]  ;;  %v387_v36 = vld [vmem:[%s1695_s30 + $0x88] sm:$0x3] }
  0x1c   : > { %467 = vrot.lane.b32.xlu1 %v429_v11, %s1619_s5  ;;  %465 = vrot.lane.b32.xlu0 %v427_v12, %s1619_s5  ;;  %v1722_v16 = vsel %vm424_vm0, %v446_v8, %v448_v9  ;;  %v515_v19 = vrot.slane %v1698_v0, 2  ;;  %v537_v22 = vrot.slane %v384_v7, 2  ;;  %v517_v23 = vrot.slane %v372_v1, 2  ;;  %v1757_v29 = vld [vmem:[%s1695_s30 + $0x20] sm:$0xff]  ;;  %v375_v37 = vld [vmem:[%s1695_s30 + $0x28] sm:$0x3] }
  0x1d   : > { %v1725_v17 = vsel %vm424_vm0, %v445_v13, %v446_v8  ;;  %v1734_v20 = vsel %vm513_vm1, %v534_v18, %v535_v14  ;;  %v450_v30 = vrot.slane %v1748_v26, 1  ;;  %v451_v31 = vrot.slane %v1754_v28, 1  ;;  %v1815_v52 = vld [vmem:[%s1695_s30 + $0x90] sm:$0xff]  ;;  %v1828_v54 = vld [vmem:[%s1695_s30 + $0x98] sm:$0xff]  ;;  %v390_v62 = vld [vmem:[%s1695_s30 + $0xa0] sm:$0x3] }
  0x1e   : > { %v516_v21 = vsel %vm513_vm1, %v514_v15, %v515_v19  ;;  %v1741_v24 = vsel %vm513_vm1, %v535_v14, %v537_v22  ;;  %v518_v25 = vsel %vm513_vm1, %v515_v19, %v517_v23  ;;  %v430_v32 = vrot.slane %v1751_v27, 1  ;;  %v1818_v53 = vld [vmem:[%s1695_s30 + $0x30] sm:$0xff]  ;;  %v1831_v55 = vld [vmem:[%s1695_s30 + $0x38] sm:$0xff]  ;;  %v378_v63 = vld [vmem:[%s1695_s30 + $0x40] sm:$0x3] }
  0x1f   : > { %v431_v33 = vrot.slane %v1757_v29, 1  ;;  %v1772_v34 = vsel %vm424_vm0, %v450_v30, %v451_v31  ;;  %v453_v38 = vrot.slane %v387_v36, 1  ;;  %v433_v39 = vrot.slane %v375_v37, 1  ;;  %2430 = vst [vmem:[#allocation6_spill] sm:$0xff] %v1831_v55  ;;  %v1056_v12 = vld [vmem:[%s2415_s3 + $0x20] sm:$0xf] }
  0x20   : > { %483 = vrot.lane.b32.xlu1 %v1722_v16, %s1619_s5  ;;  %481 = vrot.lane.b32.xlu0 %v1725_v17, %s1619_s5  ;;  %2426 = vst [vmem:[#allocation2_spill] sm:$0xff] %v1772_v34  ;;  %v539_v40 = vrot.slane %v1748_v26, 2  ;;  %v540_v41 = vrot.slane %v1754_v28, 2  ;;  %v519_v44 = vrot.slane %v1751_v27, 2  ;;  %v520_v45 = vrot.slane %v1757_v29, 2  ;;  %v1055_v13 = vld [vmem:[%s2415_s3 + $0x18] sm:$0xff] }
  0x21   : > { %v432_v35 = vsel %vm424_vm0, %v430_v32, %v431_v33  ;;  %v1786_v42 = vsel %vm424_vm0, %v451_v31, %v453_v38  ;;  %v434_v43 = vsel %vm424_vm0, %v431_v33, %v433_v39  ;;  %v542_v48 = vrot.slane %v387_v36, 2  ;;  %1483 = vmatprep.subr.msk.mxu0 %vm1106_vm2, %v1056_v12  ;;  %1517 = vmatprep.subr.msk.mxu1 %vm1106_vm2, %v1056_v12  ;;  %v1054_v18 = vld [vmem:[%s2415_s3 + $0x10] sm:$0xff]  ;;  %v1053_v19 = vld [vmem:[%s2415_s3 + $0x8] sm:$0xff] }
  0x22   : > { %2427 = vst [vmem:[#allocation3_spill] sm:$0xff] %v1786_v42  ;;  %v1795_v46 = vsel %vm513_vm1, %v539_v40, %v540_v41  ;;  %v521_v47 = vsel %vm513_vm1, %v519_v44, %v520_v45  ;;  %v522_v49 = vrot.slane %v375_v37, 2  ;;  %v455_v56 = vrot.slane %v1815_v52, 1  ;;  %1484 = vmatpush3.msk.msra.mxu0 %vm1106_vm2, %v1056_v12  ;;  %1522 = vmatpush3.msk.msra.mxu1 %vm1106_vm2, %v1056_v12  ;;  %v1901_v31 = vld [vmem:[%s1695_s30 + $0xa8] sm:$0xff]  ;;  %v1925_v40 = vld [vmem:[%s1695_s30 + $0xb0] sm:$0xff] }
  0x23   : > { %2428 = vst [vmem:[#allocation4_spill] sm:$0xff] %v1795_v46  ;;  %v1808_v50 = vsel %vm513_vm1, %v540_v41, %v542_v48  ;;  %v456_v57 = vrot.slane %v1828_v54, 1  ;;  %v435_v58 = vrot.slane %v1818_v53, 1  ;;  %v436_v59 = vrot.slane %v1831_v55, 1  ;;  %1485 = vmatprep.subr.mxu0 %v1055_v13  ;;  %1518 = vmatprep.subr.mxu1 %v1055_v13  ;;  %2431 = vst [vmem:[#allocation7_spill] sm:$0xff] %v1901_v31  ;;  %v1904_v32 = vld [vmem:[%s1695_s30 + $0x48] sm:$0xff] }
  0x24   : > { %570 = vrot.lane.b32.xlu1 %v1734_v20, %s1620_s6  ;;  %554 = vrot.lane.b32.xlu0 %v516_v21, %s1620_s6  ;;  %2429 = vst [vmem:[#allocation5_spill] sm:$0xff] %v1808_v50  ;;  %v523_v51 = vsel %vm513_vm1, %v520_v45, %v522_v49  ;;  %v458_v1 = vrot.slane %v390_v62, 1  ;;  %v438_v3 = vrot.slane %v378_v63, 1  ;;  %v544_v4 = vrot.slane %v1815_v52, 2  ;;  %v1052_v21 = vld [vmem:[%s2415_s3] sm:$0xff]  ;;  %2432 = vst [vmem:[#allocation8_spill] sm:$0xff] %v1904_v32 }
  0x25   : > { %v457_v60 = vsel %vm424_vm0, %v455_v56, %v456_v57  ;;  %v437_v61 = vsel %vm424_vm0, %v435_v58, %v436_v59  ;;  %v545_v5 = vrot.slane %v1828_v54, 2  ;;  %v524_v7 = vrot.slane %v1818_v53, 2  ;;  %1486 = vmatpush3.msra.mxu0 %v1055_v13  ;;  %1523 = vmatpush3.msra.mxu1 %v1055_v13  ;;  %2433 = vst [vmem:[#allocation9_spill] sm:$0xff] %v1925_v40  ;;  %v1928_v41 = vld [vmem:[%s1695_s30 + $0x50] sm:$0xff] }
  0x26   : > { %v459_v8 = vsel %vm424_vm0, %v456_v57, %v458_v1  ;;  %v439_v9 = vsel %vm424_vm0, %v436_v59, %v438_v3  ;;  %v525_v11 = vrot.slane %v1831_v55, 2  ;;  %1487 = vmatprep.subr.mxu0 %v1054_v18  ;;  %1519 = vmatprep.subr.mxu1 %v1054_v18  ;;  %v547_v22 = vrot.slane %v390_v62, 2  ;;  %2434 = vst [vmem:[#allocation10_spill] sm:$0xff] %v1928_v41  ;;  %v393_v59 = vld [vmem:[%s1695_s30 + $0xb8] sm:$0x3] }
  0x27   : > { %v546_v14 = vsel %vm513_vm1, %v544_v4, %v545_v5  ;;  %1488 = vmatpush3.msra.mxu0 %v1054_v18  ;;  %1524 = vmatpush3.msra.mxu1 %v1054_v18  ;;  %v527_v23 = vrot.slane %v378_v63, 2  ;;  %v461_v44 = vrot.slane %v1925_v40, 1  ;;  %v440_v45 = vrot.slane %v1904_v32, 1 }
  0x28   : > { %572 = vrot.lane.b32.xlu1 %v1741_v24, %s1620_s6  ;;  %556 = vrot.lane.b32.xlu0 %v518_v25, %s1620_s6  ;;  %v526_v15 = vsel %vm513_vm1, %v524_v7, %v525_v11  ;;  %v548_v25 = vsel %vm513_vm1, %v545_v5, %v547_v22  ;;  %v463_v63 = vrot.slane %v393_v59, 1  ;;  %v530_v12 = vrot.slane %v1928_v41, 2 }
  0x29   : > { %1489 = vmatprep.subr.mxu0 %v1053_v19  ;;  %1520 = vmatprep.subr.mxu1 %v1053_v19  ;;  %v528_v30 = vsel %vm513_vm1, %v525_v11, %v527_v23  ;;  %v529_v11 = vrot.slane %v1904_v32, 2 }
  0x2a   : > { %1490 = vmatpush3.msra.mxu0 %v1053_v19  ;;  %1525 = vmatpush3.msra.mxu1 %v1053_v19  ;;  %v464_v5 = vsel %vm424_vm0, %v461_v44, %v463_v63 }
  0x2b   : > { %1491 = vmatprep.subr.mxu0 %v1052_v21  ;;  %1521 = vmatprep.subr.mxu1 %v1052_v21  ;;  %v531_v18 = vsel %vm513_vm1, %v529_v11, %v530_v12 }
  0x2c   : > { %620 = vrot.lane.b32.xlu1 %v1748_v26, %s1621_s7  ;;  %604 = vrot.lane.b32.xlu0 %v1751_v27, %s1621_s7 }
  0x2d   : > { %1492 = vmatpush3.msra.mxu0 %v1052_v21  ;;  %1526 = vmatpush3.msra.mxu1 %v1052_v21 }
  0x30   : > { %622 = vrot.lane.b32.xlu1 %v1754_v28, %s1621_s7  ;;  %606 = vrot.lane.b32.xlu0 %v1757_v29, %s1621_s7 }
  0x34   : > { %674 = vrot.lane.b32.xlu1 %v1772_v34, %s1622_s8  ;;  %658 = vrot.lane.b32.xlu0 %v432_v35, %s1622_s8 }
  0x38   : > { %485 = vrot.lane.b32.xlu1 %v1772_v34, %s1619_s5  ;;  %469 = vrot.lane.b32.xlu0 %v432_v35, %s1619_s5 }
  0x3c   : > { %676 = vrot.lane.b32.xlu1 %v1786_v42, %s1622_s8  ;;  %660 = vrot.lane.b32.xlu0 %v434_v43, %s1622_s8 }
  0x40   : > { %727 = vrot.lane.b32.xlu1 %v1795_v46, %s1623_s9  ;;  %711 = vrot.lane.b32.xlu0 %v521_v47, %s1623_s9 }
  0x44   : > { %487 = vrot.lane.b32.xlu1 %v1786_v42, %s1619_s5  ;;  %471 = vrot.lane.b32.xlu0 %v434_v43, %s1619_s5  ;;  %v460_v43 = vrot.slane %v1901_v31, 1 }
  0x48   : > { %574 = vrot.lane.b32.xlu1 %v1795_v46, %s1620_s6  ;;  %558 = vrot.lane.b32.xlu0 %v521_v47, %s1620_s6  ;;  %v441_v47 = vrot.slane %v1928_v41, 1 }
  0x4a   : > { %v442_v56 = vsel %vm424_vm0, %v440_v45, %v441_v47 }
  0x4c   : > { %729 = vrot.lane.b32.xlu1 %v1808_v50, %s1623_s9  ;;  %713 = vrot.lane.b32.xlu0 %v523_v51, %s1623_s9 }
  0x50   : > { %777 = vrot.lane.b32.xlu1 %v1815_v52, %s1624_s10  ;;  %761 = vrot.lane.b32.xlu0 %v1818_v53, %s1624_s10 }
  0x54   : > { %576 = vrot.lane.b32.xlu1 %v1808_v50, %s1620_s6  ;;  %560 = vrot.lane.b32.xlu0 %v523_v51, %s1620_s6  ;;  %v462_v51 = vsel %vm424_vm0, %v460_v43, %v461_v44  ;;  %v552_v43 = vrot.slane %v393_v59, 2 }
  0x58   : > { %624 = vrot.lane.b32.xlu1 %v1815_v52, %s1621_s7  ;;  %608 = vrot.lane.b32.xlu0 %v1818_v53, %s1621_s7 }
  0x5c   : > { %779 = vrot.lane.b32.xlu1 %v1828_v54, %s1624_s10  ;;  %763 = vrot.lane.b32.xlu0 %v1831_v55, %s1624_s10 }
  0x60   : > { %831 = vrot.lane.b32.xlu1 %v457_v60, %s1625_s11  ;;  %815 = vrot.lane.b32.xlu0 %v437_v61, %s1625_s11 }
  0x64   : > { %626 = vrot.lane.b32.xlu1 %v1828_v54, %s1621_s7  ;;  %610 = vrot.lane.b32.xlu0 %v1831_v55, %s1621_s7 }
  0x68   : > { %678 = vrot.lane.b32.xlu1 %v457_v60, %s1622_s8  ;;  %662 = vrot.lane.b32.xlu0 %v437_v61, %s1622_s8 }
  0x6c   : > { %833 = vrot.lane.b32.xlu1 %v459_v8, %s1625_s11  ;;  %817 = vrot.lane.b32.xlu0 %v439_v9, %s1625_s11 }
  0x70   : > { %884 = vrot.lane.b32.xlu1 %v546_v14, %s1626_s28  ;;  %868 = vrot.lane.b32.xlu0 %v526_v15, %s1626_s28 }
  0x74   : > { %489 = vrot.lane.b32.xlu1 %v457_v60, %s1619_s5  ;;  %473 = vrot.lane.b32.xlu0 %v437_v61, %s1619_s5  ;;  %v381_v60 = vld [vmem:[%s1695_s30 + $0x58] sm:$0x3]  ;;  %s1997_s30 = sadd.s32 8, %s1682_s22  ;;  %s2460_s22 = smov (!%p362_p9, %s1682_s22), 15 }
  0x75   : > { %v443_v1 = vrot.slane %v381_v60, 1  ;;  %p335_p7 = scmp.lt.s32.totalorder %s1997_s30, 17  ;;  %v532_v44 = vrot.slane %v381_v60, 2 }
  0x77   : > { %v444_v7 = vsel %vm424_vm0, %v441_v47, %v443_v1  ;;  %s336_s13 = scalar_select %p335_p7, %s1997_s30, 17 }
  0x78   : > { %680 = vrot.lane.b32.xlu1 %v459_v8, %s1622_s8  ;;  %664 = vrot.lane.b32.xlu0 %v439_v9, %s1622_s8 }
  0x79   : > { %s1529_s14 = smul.u32 3, %s336_s13 }
  0x7b   : > { %s339_s15 = sadd.s32 %s1529_s14, %s1689_s24 }
  0x7c   : > { %731 = vrot.lane.b32.xlu1 %v546_v14, %s1623_s9  ;;  %715 = vrot.lane.b32.xlu0 %v526_v15, %s1623_s9  ;;  %s1424_s23 = sshll.u32 %s339_s15, 3 }
  0x7d   : > { %s2033_s27 = scalar_lea.vmem %s2413_s1, %s1424_s23 }
  0x80   : > { %886 = vrot.lane.b32.xlu1 %v548_v25, %s1626_s28  ;;  %870 = vrot.lane.b32.xlu0 %v528_v30, %s1626_s28 }
  0x84   : > { %491 = vrot.lane.b32.xlu1 %v459_v8, %s1619_s5  ;;  %475 = vrot.lane.b32.xlu0 %v439_v9, %s1619_s5  ;;  %v549_v8 = vrot.slane %v1901_v31, 2  ;;  %v550_v9 = vrot.slane %v1925_v40, 2 }
  0x88   : > { %578 = vrot.lane.b32.xlu1 %v546_v14, %s1620_s6  ;;  %562 = vrot.lane.b32.xlu0 %v526_v15, %s1620_s6  ;;  %v551_v15 = vsel %vm513_vm1, %v549_v8, %v550_v9 }
  0x8c   : > { %733 = vrot.lane.b32.xlu1 %v548_v25, %s1623_s9  ;;  %717 = vrot.lane.b32.xlu0 %v528_v30, %s1623_s9 }
  0x8e   : > { %v1906_v33 = vpop.permute.xlu1 %467  ;;  %v1908_v35 = vpop.permute.xlu0 %465 }
  0x90   : > { %781 = vrot.lane.b32.xlu1 %v1901_v31, %s1624_s10  ;;  %765 = vrot.lane.b32.xlu0 %v1904_v32, %s1624_s10 }
  0x92   : > { %v1914_v36 = vpop.permute.xlu1 %483  ;;  %v1916_v37 = vpop.permute.xlu0 %481 }
  0x94   : > { %580 = vrot.lane.b32.xlu1 %v548_v25, %s1620_s6  ;;  %564 = vrot.lane.b32.xlu0 %v528_v30, %s1620_s6 }
  0x96   : > { %v1920_v38 = vpop.permute.xlu1 %570  ;;  %v1922_v39 = vpop.permute.xlu0 %554 }
  0x98   : > { %628 = vrot.lane.b32.xlu1 %v1901_v31, %s1621_s7  ;;  %612 = vrot.lane.b32.xlu0 %v1904_v32, %s1621_s7 }
  0x9a   : > { %v1938_v48 = vpop.permute.xlu1 %572  ;;  %v1940_v49 = vpop.permute.xlu0 %556 }
  0x9c   : > { %783 = vrot.lane.b32.xlu1 %v1925_v40, %s1624_s10  ;;  %767 = vrot.lane.b32.xlu0 %v1928_v41, %s1624_s10 }
  0x9e   : > { %v1948_v57 = vpop.permute.xlu1 %620  ;;  %v1950_v58 = vpop.permute.xlu0 %604 }
  0xa0   : > { %835 = vrot.lane.b32.xlu1 %v462_v51, %s1625_s11  ;;  %819 = vrot.lane.b32.xlu0 %v442_v56, %s1625_s11 }
  0xa2   : > { %v1956_v61 = vpop.permute.xlu1 %622  ;;  %v1958_v62 = vpop.permute.xlu0 %606 }
  0xa4   : > { %630 = vrot.lane.b32.xlu1 %v1925_v40, %s1621_s7  ;;  %614 = vrot.lane.b32.xlu0 %v1928_v41, %s1621_s7  ;;  %v2055_v40 = vld [vmem:[%s2033_s27 + $0x8] sm:$0xff] }
  0xa5   : > { %v654_v46 = vrot.slane %v2055_v40, 1 }
  0xa6   : > { %v1964_v3 = vpop.permute.xlu1 %674  ;;  %v1966_v4 = vpop.permute.xlu0 %658 }
  0xa8   : > { %682 = vrot.lane.b32.xlu1 %v462_v51, %s1622_s8  ;;  %666 = vrot.lane.b32.xlu0 %v442_v56, %s1622_s8 }
  0xaa   : > { %v1976_v13 = vpop.permute.xlu1 %485  ;;  %v1978_v14 = vpop.permute.xlu0 %469 }
  0xab   : > { %v927_v32 = vsel %vm916_vm3, %v1748_v26, %v1976_v13  ;;  %v919_v31 = vsel %vm916_vm3, %v1751_v27, %v1978_v14 }
  0xac   : > { %837 = vrot.lane.b32.xlu1 %v464_v5, %s1625_s11  ;;  %821 = vrot.lane.b32.xlu0 %v444_v7, %s1625_s11 }
  0xae   : > { %v1984_v19 = vpop.permute.xlu1 %676  ;;  %v1986_v21 = vpop.permute.xlu0 %660 }
  0xb0   : > { %888 = vrot.lane.b32.xlu1 %v551_v15, %s1626_s28  ;;  %872 = vrot.lane.b32.xlu0 %v531_v18, %s1626_s28 }
  0xb2   : > { %v1990_v22 = vpop.permute.xlu1 %727  ;;  %v1992_v23 = vpop.permute.xlu0 %711 }
  0xb4   : > { %493 = vrot.lane.b32.xlu1 %v462_v51, %s1619_s5  ;;  %477 = vrot.lane.b32.xlu0 %v442_v56, %s1619_s5  ;;  %v553_v51 = vsel %vm513_vm1, %v550_v9, %v552_v43  ;;  %v533_v56 = vsel %vm513_vm1, %v530_v12, %v532_v44 }
  0xb6   : > { %v1999_v25 = vpop.permute.xlu1 %487  ;;  %v2001_v30 = vpop.permute.xlu0 %471 }
  0xb8   : > { %684 = vrot.lane.b32.xlu1 %v464_v5, %s1622_s8  ;;  %668 = vrot.lane.b32.xlu0 %v444_v7, %s1622_s8 }
  0xba   : > { %v575_v45 = vpop.permute.xlu1 %574  ;;  %v559_v47 = vpop.permute.xlu0 %558 }
  0xbc   : > { %735 = vrot.lane.b32.xlu1 %v551_v15, %s1623_s9  ;;  %719 = vrot.lane.b32.xlu0 %v531_v18, %s1623_s9 }
  0xbe   : > { %v2011_v63 = vpop.permute.xlu1 %729  ;;  %v2013_v1 = vpop.permute.xlu0 %713 }
  0xc0   : > { %890 = vrot.lane.b32.xlu1 %v553_v51, %s1626_s28  ;;  %874 = vrot.lane.b32.xlu0 %v533_v56, %s1626_s28 }
  0xc2   : > { %v2017_v59 = vpop.permute.xlu1 %777  ;;  %v2019_v60 = vpop.permute.xlu0 %761 }
  0xc4   : > { %495 = vrot.lane.b32.xlu1 %v464_v5, %s1619_s5  ;;  %479 = vrot.lane.b32.xlu0 %v444_v7, %s1619_s5  ;;  %v2038_v5 = vld [vmem:[%s2033_s27] sm:$0xff]  ;;  %s346_s5 = sadd.s32 1, %s1997_s30 }
  0xc5   : > { %v653_v50 = vrot.slane %v2038_v5, 1  ;;  %p2165_p8 = scmp.lt.s32.totalorder %s346_s5, 17 }
  0xc6   : > { %v2024_v8 = vpop.permute.xlu1 %576  ;;  %v2026_v9 = vpop.permute.xlu0 %560 }
  0xc7   : > { %s2458_s5 = smov (!%p2165_p8, %s346_s5), 17 }
  0xc8   : > { %582 = vrot.lane.b32.xlu1 %v551_v15, %s1620_s6  ;;  %566 = vrot.lane.b32.xlu0 %v531_v18, %s1620_s6 }
  0xca   : > { %v625_v11 = vpop.permute.xlu1 %624  ;;  %v609_v12 = vpop.permute.xlu0 %608 }
  0xcc   : > { %737 = vrot.lane.b32.xlu1 %v553_v51, %s1623_s9  ;;  %721 = vrot.lane.b32.xlu0 %v533_v56, %s1623_s9 }
  0xce   : > { %v2040_v7 = vpop.permute.xlu1 %779  ;;  %v2042_v15 = vpop.permute.xlu0 %763 }
  0xd0   : > { %785 = vrot.lane.b32.xlu1 %v2038_v5, %s1624_s10  ;;  %769 = vrot.lane.b32.xlu0 %v1712_v10, %s1624_s10 }
  0xd2   : > { %v832_v18 = vpop.permute.xlu1 %831  ;;  %v816_v43 = vpop.permute.xlu0 %815 }
  0xd4   : > { %584 = vrot.lane.b32.xlu1 %v553_v51, %s1620_s6  ;;  %568 = vrot.lane.b32.xlu0 %v533_v56, %s1620_s6  ;;  %v944_v51 = vsel %vm933_vm4, %v927_v32, %v575_v45  ;;  %v936_v56 = vsel %vm933_vm4, %v919_v31, %v559_v47  ;;  %v917_v31 = vsel %vm916_vm3, %v1702_v2, %v1908_v35 }
  0xd5   : > { %v961_v13 = vsel %vm950_vm5, %v944_v51, %v625_v11  ;;  %v953_v42 = vsel %vm950_vm5, %v936_v56, %v609_v12  ;;  %v925_v32 = vsel %vm916_vm3, %v1712_v10, %v1916_v37  ;;  %v655_v47 = vsel %vm424_vm0, %v653_v50, %v654_v46 }
  0xd6   : > { %v2050_v44 = vpop.permute.xlu1 %626  ;;  %v2052_v41 = vpop.permute.xlu0 %610  ;;  %v942_v45 = vsel %vm933_vm4, %v925_v32, %v1920_v38  ;;  %v707_v32 = vrot.slane %v2055_v40, 2 }
  0xd7   : > { %v959_v2 = vsel %vm950_vm5, %v942_v45, %v1948_v57 }
  0xd8   : > { %632 = vrot.lane.b32.xlu1 %v2038_v5, %s1621_s7  ;;  %616 = vrot.lane.b32.xlu0 %v1712_v10, %s1621_s7  ;;  %v976_v38 = vsel %vm967_vm6, %v959_v2, %v1964_v3 }
  0xd9   : > { %v993_v50 = vsel %vm984_vm7, %v976_v38, %v1990_v22 }
  0xda   : > { %v679_v27 = vpop.permute.xlu1 %678  ;;  %v663_v14 = vpop.permute.xlu0 %662 }
  0xdb   : > { %v2074_v34 = vsel %vm967_vm6, %v961_v13, %v679_v27  ;;  %v2077_v55 = vsel %vm967_vm6, %v953_v42, %v663_v14  ;;  %v934_v42 = vsel %vm933_vm4, %v917_v31, %v1922_v39  ;;  %v920_v13 = vsel %vm916_vm3, %v1757_v29, %v2001_v30 }
  0xdc   : > { %787 = vrot.lane.b32.xlu1 %v2055_v40, %s1624_s10  ;;  %771 = vrot.lane.b32.xlu0 %v1707_v6, %s1624_s10  ;;  %v951_v10 = vsel %vm950_vm5, %v934_v42, %v1950_v58  ;;  %v1010_v58 = vsel %vm1001_vm8, %v993_v50, %v2017_v59  ;;  %v706_v27 = vrot.slane %v2038_v5, 2  ;;  %v937_v31 = vsel %vm933_vm4, %v920_v13, %v2026_v9 }
  0xdd   : > { %v968_v39 = vsel %vm967_vm6, %v951_v10, %v1966_v4  ;;  %v2118_v4 = vld [vmem:[%s2033_s27 + $0x10] sm:$0x3]  ;;  %v1027_v22 = vsel %vm1018_vm9, %v1010_v58, %v832_v18  ;;  %v954_v30 = vsel %vm950_vm5, %v937_v31, %v2052_v41 }
  0xde   : > { %v2098_v35 = vpop.permute.xlu1 %833  ;;  %v2100_v37 = vpop.permute.xlu0 %817  ;;  %v985_v57 = vsel %vm984_vm7, %v968_v39, %v1992_v23  ;;  %v656_v59 = vrot.slane %v2118_v4, 1 }
  0xdf   : > { %v1002_v3 = vsel %vm1001_vm8, %v985_v57, %v2019_v60 }
  0xe0   : > { %839 = vrot.lane.b32.xlu1 %v655_v47, %s1625_s11  ;;  %823 = vrot.lane.b32.xlu0 %v1725_v17, %s1625_s11  ;;  %v1019_v11 = vsel %vm1018_vm9, %v1002_v3, %v816_v43  ;;  %v928_v43 = vsel %vm916_vm3, %v1754_v28, %v1999_v25  ;;  %v657_v25 = vsel %vm424_vm0, %v654_v46, %v656_v59 }
  0xe1   : > { %v945_v14 = vsel %vm933_vm4, %v928_v43, %v2024_v8  ;;  %v926_v46 = vsel %vm916_vm3, %v1707_v6, %v1914_v36 }
  0xe2   : > { %v885_v23 = vpop.permute.xlu1 %884  ;;  %v869_v12 = vpop.permute.xlu0 %868  ;;  %v962_v29 = vsel %vm950_vm5, %v945_v14, %v2050_v44 }
  0xe3   : > { %v1044_v51 = vsel %vm1035_vm10, %v1027_v22, %v885_v23  ;;  %v1036_v56 = vsel %vm1035_vm10, %v1019_v11, %v869_v12 }
  0xe4   : > { %634 = vrot.lane.b32.xlu1 %v2055_v40, %s1621_s7  ;;  %1505 = vmatprep.mubr.msk.f32.mxu1 %vm1057_vm11, %v1044_v51  ;;  %v943_v40 = vsel %vm933_vm4, %v926_v46, %v1938_v48  ;;  %v2436_v51 = vld [vmem:[#allocation6_spill] sm:$0xff] }
  0xe5   : > { %618 = vrot.lane.b32.xlu0 %v1707_v6, %s1621_s7  ;;  %1493 = vmatprep.mubr.msk.f32.mxu0 %vm1057_vm11, %v1036_v56  ;;  %v960_v6 = vsel %vm950_vm5, %v943_v40, %v1956_v61  ;;  %s1530_s7 = smul.u32 3, %s2458_s5 }
  0xe6   : > { %v490_v60 = vpop.permute.xlu1 %489  ;;  %v474_v18 = vpop.permute.xlu0 %473  ;;  %v977_v48 = vsel %vm967_vm6, %v960_v6, %v1984_v19 }
  0xe7   : > { %v994_v42 = vsel %vm984_vm7, %v977_v48, %v2011_v63  ;;  %s353_s29 = sadd.s32 %s1530_s7, %s1689_s24  ;;  %v929_v38 = vsel %vm916_vm3, %v1815_v52, %v490_v60 }
  0xe8   : > { %686 = vrot.lane.b32.xlu1 %v655_v47, %s1622_s8  ;;  %v1011_v61 = vsel %vm1001_vm8, %v994_v42, %v2040_v7  ;;  %v709_v7 = vrot.slane %v2118_v4, 2 }
  0xe9   : > { %670 = vrot.lane.b32.xlu0 %v1725_v17, %s1622_s8  ;;  %v918_v17 = vsel %vm916_vm3, %v1698_v0, %v1906_v33  ;;  %v708_v0 = vsel %vm513_vm1, %v706_v27, %v707_v32  ;;  %v1028_v19 = vsel %vm1018_vm9, %v1011_v61, %v2098_v35 }
  0xea   : > { %v681_v5 = vpop.permute.xlu1 %680  ;;  %v665_v45 = vpop.permute.xlu0 %664  ;;  %v935_v41 = vsel %vm933_vm4, %v918_v17, %v1940_v49 }
  0xeb   : > { %v2153_v8 = vsel %vm967_vm6, %v962_v29, %v681_v5  ;;  %v2156_v9 = vsel %vm967_vm6, %v954_v30, %v665_v45  ;;  %v952_v33 = vsel %vm950_vm5, %v935_v41, %v1958_v62  ;;  %v2437_v29 = vld [vmem:[#allocation2_spill] sm:$0xff]  ;;  %v2438_v45 = vld [vmem:[#allocation3_spill] sm:$0xff] }
  0xec   : > { %841 = vrot.lane.b32.xlu1 %v657_v25, %s1625_s11  ;;  %v969_v49 = vsel %vm967_vm6, %v952_v33, %v1986_v21 }
  0xed   : > { %825 = vrot.lane.b32.xlu0 %v1722_v16, %s1625_s11  ;;  %v986_v47 = vsel %vm984_vm7, %v969_v49, %v2013_v1 }
  0xee   : > { %v2180_v36 = vpop.permute.xlu1 %731  ;;  %v2182_v44 = vpop.permute.xlu0 %715  ;;  %v1003_v62 = vsel %vm1001_vm8, %v986_v47, %v2042_v15  ;;  %v2440_v47 = vld [vmem:[#allocation5_spill] sm:$0xff] }
  0xef   : > { %v1020_v21 = vsel %vm1018_vm9, %v1003_v62, %v2100_v37  ;;  %v710_v37 = vsel %vm513_vm1, %v707_v32, %v709_v7 }
  0xf0   : > { %892 = vrot.lane.b32.xlu1 %v708_v0, %s1626_s28 }
  0xf1   : > { %876 = vrot.lane.b32.xlu0 %v1734_v20, %s1626_s28 }
  0xf2   : > { %v887_v63 = vpop.permute.xlu1 %886  ;;  %v871_v1 = vpop.permute.xlu0 %870 }
  0xf3   : > { %v1045_v2 = vsel %vm1035_vm10, %v1028_v19, %v887_v63  ;;  %v1037_v10 = vsel %vm1035_vm10, %v1020_v21, %v871_v1 }
  0xf4   : > { %688 = vrot.lane.b32.xlu1 %v657_v25, %s1622_s8  ;;  %1506 = vmatmul.mubr.msk.f32.vlgmr.msra.gmra.mxu1 %vm1057_vm11, %v1045_v2  ;;  %v995_v2 = vsel %vm984_vm7, %v2074_v34, %v2180_v36 }
  0xf5   : > { %672 = vrot.lane.b32.xlu0 %v1722_v16, %s1622_s8  ;;  %1494 = vmatmul.mubr.msk.f32.vlgmr.msra.gmra.mxu0 %vm1057_vm11, %v1037_v10  ;;  %v921_v16 = vsel %vm916_vm3, %v1818_v53, %v474_v18  ;;  %s1426_s8 = sshll.u32 %s353_s29, 3  ;;  %v987_v10 = vsel %vm984_vm7, %v2077_v55, %v2182_v44 }
  0xf6   : > { %v492_v15 = vpop.permute.xlu1 %491  ;;  %v476_v35 = vpop.permute.xlu0 %475  ;;  %s355_s30 = scalar_lea.vmem %s2414_s2, %s1426_s8 }
  0xf7   : > { %v397_v52 = vld [vmem:[%s355_s30] sm:$0xff]  ;;  %v398_v22 = vld [vmem:[%s355_s30 + $0x8] sm:$0xff]  ;;  %v930_v12 = vsel %vm916_vm3, %v1828_v54, %v492_v15  ;;  %v922_v56 = vsel %vm916_vm3, %v2436_v51, %v476_v35  ;;  %v399_v59 = vld [vmem:[%s355_s30 + $0x10] sm:$0x3] }
  0xf8   : > { %739 = vrot.lane.b32.xlu1 %v708_v0, %s1623_s9  ;;  %v810_v11 = vrot.slane %v397_v52, 1  ;;  %v811_v23 = vrot.slane %v398_v22, 1  ;;  %v813_v13 = vrot.slane %v399_v59, 1  ;;  %v863_v32 = vrot.slane %v397_v52, 2  ;;  %v2439_v0 = vld [vmem:[#allocation4_spill] sm:$0xff] }
  0xf9   : > { %723 = vrot.lane.b32.xlu0 %v1734_v20, %s1623_s9  ;;  %v864_v25 = vrot.slane %v398_v22, 2  ;;  %v866_v46 = vrot.slane %v399_v59, 2 }
  0xfa   : > { %v579_v39 = vpop.permute.xlu1 %578  ;;  %v563_v50 = vpop.permute.xlu0 %562  ;;  %v814_v30 = vsel %vm424_vm0, %v811_v23, %v813_v13 }
  0xfb   : > { %v946_v57 = vsel %vm933_vm4, %v929_v38, %v579_v39  ;;  %v938_v58 = vsel %vm933_vm4, %v921_v16, %v563_v50  ;;  %v865_v17 = vsel %vm513_vm1, %v863_v32, %v864_v25  ;;  %v867_v6 = vsel %vm513_vm1, %v864_v25, %v866_v46 }
  0xfc   : > { %894 = vrot.lane.b32.xlu1 %v710_v37, %s1626_s28 }
  0xfd   : > { %878 = vrot.lane.b32.xlu0 %v1741_v24, %s1626_s28 }
  0xfe   : > { %v2227_v20 = vpop.permute.xlu1 %733  ;;  %v2229_v3 = vpop.permute.xlu0 %717 }
 0x100   : > { %741 = vrot.lane.b32.xlu1 %v710_v37, %s1623_s9 }
 0x101   : > { %725 = vrot.lane.b32.xlu0 %v1741_v24, %s1623_s9  ;;  %s1428_s9 = sshll.u32 %s2460_s22, 1 }
 0x102   : > { %v782_v53 = vpop.permute.xlu1 %781  ;;  %v766_v4 = vpop.permute.xlu0 %765 }
 0x103   : > { %v1012_v7 = vsel %vm1001_vm8, %v995_v2, %v782_v53  ;;  %v1004_v15 = vsel %vm1001_vm8, %v987_v10, %v766_v4  ;;  %v996_v4 = vsel %vm984_vm7, %v2153_v8, %v2227_v20  ;;  %v2441_v20 = vld [vmem:[#allocation7_spill] sm:$0xff] }
 0x104   : > { %789 = vrot.lane.b32.xlu1 %v397_v52, %s1624_s10 }
 0x105   : > { %773 = vrot.lane.b32.xlu0 %v1748_v26, %s1624_s10  ;;  %v812_v26 = vsel %vm424_vm0, %v810_v11, %v811_v23 }
 0x106   : > { %v581_v60 = vpop.permute.xlu1 %580  ;;  %v565_v24 = vpop.permute.xlu0 %564 }
 0x107   : > { %v947_v18 = vsel %vm933_vm4, %v930_v12, %v581_v60  ;;  %v939_v43 = vsel %vm933_vm4, %v922_v56, %v565_v24 }
 0x108   : > { %791 = vrot.lane.b32.xlu1 %v398_v22, %s1624_s10  ;;  %v988_v22 = vsel %vm984_vm7, %v2156_v9, %v2229_v3 }
 0x109   : > { %775 = vrot.lane.b32.xlu0 %v1754_v28, %s1624_s10  ;;  %s1429_s10 = sshll.u32 %s2456_s16, 5 }
 0x10a   : > { %v629_v27 = vpop.permute.xlu1 %628  ;;  %v613_v54 = vpop.permute.xlu0 %612 }
 0x10b   : > { %v963_v14 = vsel %vm950_vm5, %v946_v57, %v629_v27  ;;  %v955_v31 = vsel %vm950_vm5, %v938_v58, %v613_v54 }
 0x10c   : > { %843 = vrot.lane.b32.xlu1 %v812_v26, %s1625_s11 }
 0x10d   : > { %827 = vrot.lane.b32.xlu0 %v2437_v29, %s1625_s11 }
 0x10e   : > { %v784_v5 = vpop.permute.xlu1 %783  ;;  %v768_v28 = vpop.permute.xlu0 %767 }
 0x10f   : > { %v1013_v11 = vsel %vm1001_vm8, %v996_v4, %v784_v5  ;;  %v1005_v23 = vsel %vm1001_vm8, %v988_v22, %v768_v28 }
 0x110   : > { %845 = vrot.lane.b32.xlu1 %v814_v30, %s1625_s11 }
 0x111   : > { %829 = vrot.lane.b32.xlu0 %v2438_v45, %s1625_s11  ;;  %s366_s11 = sadd.s32 %s1429_s10, %s1428_s9 }
 0x112   : > { %v836_v40 = vpop.permute.xlu1 %835  ;;  %v820_v41 = vpop.permute.xlu0 %819 }
 0x113   : > { %v1029_v35 = vsel %vm1018_vm9, %v1012_v7, %v836_v40  ;;  %v1021_v37 = vsel %vm1018_vm9, %v1004_v15, %v820_v41 }
 0x114   : > { %896 = vrot.lane.b32.xlu1 %v865_v17, %s1626_s28 }
 0x115   : > { %880 = vrot.lane.b32.xlu0 %v2439_v0, %s1626_s28 }
 0x116   : > { %v631_v33 = vpop.permute.xlu1 %630  ;;  %v615_v48 = vpop.permute.xlu0 %614 }
 0x117   : > { %v964_v49 = vsel %vm950_vm5, %v947_v18, %v631_v33  ;;  %v956_v42 = vsel %vm950_vm5, %v939_v43, %v615_v48  ;;  %v2442_v18 = vld [vmem:[#allocation8_spill] sm:$0xff] }
 0x118   : > { %898 = vrot.lane.b32.xlu1 %v867_v6, %s1626_s28 }
 0x119   : > { %882 = vrot.lane.b32.xlu0 %v2440_v47, %s1626_s28  ;;  %s1430_s28 = sshll.u32 %s366_s11, 3 }
 0x11a   : > { %v683_v61 = vpop.permute.xlu1 %682  ;;  %v667_v62 = vpop.permute.xlu0 %666  ;;  %s2379_s15 = scalar_lea.vmem %s2416_s4, %s1430_s28 }
 0x11b   : > { %v2270_v19 = vsel %vm967_vm6, %v963_v14, %v683_v61  ;;  %v2273_v21 = vsel %vm967_vm6, %v955_v31, %v667_v62 }
 0x11e   : > { %v838_v63 = vpop.permute.xlu1 %837  ;;  %v822_v1 = vpop.permute.xlu0 %821 }
 0x11f   : > { %v1030_v12 = vsel %vm1018_vm9, %v1013_v11, %v838_v63  ;;  %v1022_v51 = vsel %vm1018_vm9, %v1005_v23, %v822_v1 }
 0x122   : > { %v889_v38 = vpop.permute.xlu1 %888  ;;  %v873_v16 = vpop.permute.xlu0 %872 }
 0x123   : > { %v1046_v39 = vsel %vm1035_vm10, %v1029_v35, %v889_v38  ;;  %v1038_v50 = vsel %vm1035_vm10, %v1021_v37, %v873_v16 }
 0x124   : > { %1496 = vmatprep.mubr.msk.f32.mxu0 %vm1057_vm11, %v1038_v50  ;;  %1508 = vmatprep.mubr.msk.f32.mxu1 %vm1057_vm11, %v1046_v39 }
 0x126   : > { %v494_v34 = vpop.permute.xlu1 %493  ;;  %v478_v55 = vpop.permute.xlu0 %477 }
 0x127   : > { %v931_v3 = vsel %vm916_vm3, %v2441_v20, %v494_v34  ;;  %v923_v43 = vsel %vm916_vm3, %v2442_v18, %v478_v55 }
 0x12a   : > { %v685_v36 = vpop.permute.xlu1 %684  ;;  %v669_v44 = vpop.permute.xlu0 %668 }
 0x12b   : > { %v981_v57 = vsel %vm967_vm6, %v964_v49, %v685_v36  ;;  %v973_v58 = vsel %vm967_vm6, %v956_v42, %v669_v44 }
 0x12e   : > { %v736_v52 = vpop.permute.xlu1 %735  ;;  %v720_v53 = vpop.permute.xlu0 %719 }
 0x12f   : > { %v997_v42 = vsel %vm984_vm7, %v2270_v19, %v736_v52  ;;  %v989_v47 = vsel %vm984_vm7, %v2273_v21, %v720_v53 }
 0x132   : > { %v891_v56 = vpop.permute.xlu1 %890  ;;  %v875_v59 = vpop.permute.xlu0 %874 }
 0x133   : > { %v1047_v60 = vsel %vm1035_vm10, %v1030_v12, %v891_v56  ;;  %v1039_v24 = vsel %vm1035_vm10, %v1022_v51, %v875_v59 }
 0x134   : > { %1497 = vmatmul.mubr.msk.f32.gmra.mxu0 %vm1057_vm11, %v1039_v24  ;;  %1509 = vmatmul.mubr.msk.f32.gmra.mxu1 %vm1057_vm11, %v1047_v60 }
 0x136   : > { %v2305_v8 = vpop.permute.xlu1 %495  ;;  %v2307_v9 = vpop.permute.xlu0 %479 }
 0x13a   : > { %v583_v26 = vpop.permute.xlu1 %582  ;;  %v567_v13 = vpop.permute.xlu0 %566 }
 0x13b   : > { %v948_v27 = vsel %vm933_vm4, %v931_v3, %v583_v26  ;;  %v940_v54 = vsel %vm933_vm4, %v923_v43, %v567_v13  ;;  %v2443_v3 = vld [vmem:[#allocation9_spill] sm:$0xff]  ;;  %v2444_v13 = vld [vmem:[#allocation10_spill] sm:$0xff] }
 0x13c   : > { %v932_v18 = vsel %vm916_vm3, %v2443_v3, %v2305_v8 }
 0x13e   : > { %v738_v14 = vpop.permute.xlu1 %737  ;;  %v722_v31 = vpop.permute.xlu0 %721 }
 0x13f   : > { %v998_v38 = vsel %vm984_vm7, %v981_v57, %v738_v14  ;;  %v990_v16 = vsel %vm984_vm7, %v973_v58, %v722_v31  ;;  %v924_v14 = vsel %vm916_vm3, %v2444_v13, %v2307_v9 }
 0x142   : > { %v786_v32 = vpop.permute.xlu1 %785  ;;  %v770_v25 = vpop.permute.xlu0 %769 }
 0x143   : > { %v1014_v61 = vsel %vm1001_vm8, %v997_v42, %v786_v32  ;;  %v1006_v62 = vsel %vm1001_vm8, %v989_v47, %v770_v25 }
 0x146   : > { %v585_v29 = vpop.permute.xlu1 %584  ;;  %v569_v30 = vpop.permute.xlu0 %568 }
 0x147   : > { %v941_v32 = vsel %vm933_vm4, %v924_v14, %v569_v30 }
 0x14a   : > { %v633_v5 = vpop.permute.xlu1 %632  ;;  %v617_v28 = vpop.permute.xlu0 %616 }
 0x14b   : > { %v965_v56 = vsel %vm950_vm5, %v948_v27, %v633_v5  ;;  %v957_v60 = vsel %vm950_vm5, %v940_v54, %v617_v28  ;;  %v949_v27 = vsel %vm933_vm4, %v932_v18, %v585_v29 }
 0x14e   : > { %v788_v45 = vpop.permute.xlu1 %787  ;;  %v772_v17 = vpop.permute.xlu0 %771 }
 0x14f   : > { %v1015_v39 = vsel %vm1001_vm8, %v998_v38, %v788_v45  ;;  %v1007_v50 = vsel %vm1001_vm8, %v990_v16, %v772_v17 }
 0x152   : > { %v840_v46 = vpop.permute.xlu1 %839  ;;  %v824_v40 = vpop.permute.xlu0 %823 }
 0x153   : > { %v1031_v63 = vsel %vm1018_vm9, %v1014_v61, %v840_v46  ;;  %v1023_v2 = vsel %vm1018_vm9, %v1006_v62, %v824_v40 }
 0x156   : > { %v635_v41 = vpop.permute.xlu1 %634 }
 0x157   : > { %v619_v0 = vpop.permute.xlu0 %618  ;;  %v966_v25 = vsel %vm950_vm5, %v949_v27, %v635_v41 }
 0x158   : > { %v958_v45 = vsel %vm950_vm5, %v941_v32, %v619_v0 }
 0x15a   : > { %v687_v6 = vpop.permute.xlu1 %686 }
 0x15b   : > { %v671_v33 = vpop.permute.xlu0 %670  ;;  %v982_v24 = vsel %vm967_vm6, %v965_v56, %v687_v6 }
 0x15c   : > { %v974_v43 = vsel %vm967_vm6, %v957_v60, %v671_v33 }
 0x15e   : > { %v842_v48 = vpop.permute.xlu1 %841 }
 0x15f   : > { %v826_v49 = vpop.permute.xlu0 %825  ;;  %v1032_v34 = vsel %vm1018_vm9, %v1015_v39, %v842_v48 }
 0x160   : > { %v1024_v36 = vsel %vm1018_vm9, %v1007_v50, %v826_v49 }
 0x162   : > { %v893_v1 = vpop.permute.xlu1 %892 }
 0x163   : > { %v1048_v10 = vsel %vm1035_vm10, %v1031_v63, %v893_v1  ;;  %v877_v7 = vpop.permute.xlu0 %876 }
 0x164   : > { %v1040_v15 = vsel %vm1035_vm10, %v1023_v2, %v877_v7  ;;  %1511 = vmatprep.mubr.msk.f32.mxu1 %vm1057_vm11, %v1048_v10 }
 0x165   : > { %1499 = vmatprep.mubr.msk.f32.mxu0 %vm1057_vm11, %v1040_v15 }
 0x166   : > { %v689_v19 = vpop.permute.xlu1 %688 }
 0x167   : > { %v673_v21 = vpop.permute.xlu0 %672  ;;  %v983_v17 = vsel %vm967_vm6, %v966_v25, %v689_v19 }
 0x168   : > { %v975_v40 = vsel %vm967_vm6, %v958_v45, %v673_v21 }
 0x16a   : > { %v740_v35 = vpop.permute.xlu1 %739 }
 0x16b   : > { %v724_v37 = vpop.permute.xlu0 %723  ;;  %v999_v26 = vsel %vm984_vm7, %v982_v24, %v740_v35 }
 0x16c   : > { %v991_v31 = vsel %vm984_vm7, %v974_v43, %v724_v37 }
 0x16e   : > { %v895_v55 = vpop.permute.xlu1 %894 }
 0x16f   : > { %v1049_v44 = vsel %vm1035_vm10, %v1032_v34, %v895_v55  ;;  %v879_v52 = vpop.permute.xlu0 %878 }
 0x170   : > { %v1041_v53 = vsel %vm1035_vm10, %v1024_v36, %v879_v52  ;;  %1512 = vmatmul.mubr.msk.f32.gmra.mxu1 %vm1057_vm11, %v1049_v44 }
 0x171   : > { %1500 = vmatmul.mubr.msk.f32.gmra.mxu0 %vm1057_vm11, %v1041_v53 }
 0x172   : > { %v742_v57 = vpop.permute.xlu1 %741 }
 0x173   : > { %v726_v58 = vpop.permute.xlu0 %725  ;;  %v1000_v30 = vsel %vm984_vm7, %v983_v17, %v742_v57 }
 0x174   : > { %v992_v0 = vsel %vm984_vm7, %v975_v40, %v726_v58 }
 0x176   : > { %v790_v4 = vpop.permute.xlu1 %789 }
 0x177   : > { %v774_v22 = vpop.permute.xlu0 %773  ;;  %v1016_v54 = vsel %vm1001_vm8, %v999_v26, %v790_v4 }
 0x178   : > { %v1008_v8 = vsel %vm1001_vm8, %v991_v31, %v774_v22 }
 0x17a   : > { %v792_v11 = vpop.permute.xlu1 %791 }
 0x17b   : > { %v776_v23 = vpop.permute.xlu0 %775  ;;  %v1017_v6 = vsel %vm1001_vm8, %v1000_v30, %v792_v11 }
 0x17c   : > { %v1009_v33 = vsel %vm1001_vm8, %v992_v0, %v776_v23 }
 0x17e   : > { %v844_v12 = vpop.permute.xlu1 %843 }
 0x17f   : > { %v828_v51 = vpop.permute.xlu0 %827  ;;  %v1033_v5 = vsel %vm1018_vm9, %v1016_v54, %v844_v12 }
 0x180   : > { %v1025_v9 = vsel %vm1018_vm9, %v1008_v8, %v828_v51 }
 0x182   : > { %v846_v59 = vpop.permute.xlu1 %845 }
 0x183   : > { %v830_v20 = vpop.permute.xlu0 %829  ;;  %v1034_v48 = vsel %vm1018_vm9, %v1017_v6, %v846_v59 }
 0x184   : > { %v1026_v42 = vsel %vm1018_vm9, %v1009_v33, %v830_v20 }
 0x186   : > { %v897_v28 = vpop.permute.xlu1 %896 }
 0x187   : > { %v1050_v29 = vsel %vm1035_vm10, %v1033_v5, %v897_v28  ;;  %v881_v46 = vpop.permute.xlu0 %880 }
 0x188   : > { %v1042_v41 = vsel %vm1035_vm10, %v1025_v9, %v881_v46  ;;  %1514 = vmatprep.mubr.msk.f32.mxu1 %vm1057_vm11, %v1050_v29 }
 0x189   : > { %1502 = vmatprep.mubr.msk.f32.mxu0 %vm1057_vm11, %v1042_v41 }
 0x18a   : > { %v899_v49 = vpop.permute.xlu1 %898 }
 0x18b   : > { %v1051_v47 = vsel %vm1035_vm10, %v1034_v48, %v899_v49  ;;  %v883_v61 = vpop.permute.xlu0 %882 }
 0x18c   : > { %v1043_v62 = vsel %vm1035_vm10, %v1026_v42, %v883_v61  ;;  %1515 = vmatmul.mubr.msk.f32.gmra.mxu1 %vm1057_vm11, %v1051_v47 }
 0x18d   : > { %1503 = vmatmul.mubr.msk.f32.gmra.mxu0 %vm1057_vm11, %v1043_v62 }
 0x1b4   : > { %v1507_v63 = vpop.f32.mrf.mxu1 }
 0x1b5   : > { %v1495_v1 = vpop.f32.mrf.mxu0  ;;  %1264 = vst [vmem:[%s2379_s15 + $0x48] sm:$0xff] %v1507_v63 }
 0x1b6   : > { %1256 = vst [vmem:[%s2379_s15 + $0x8] sm:$0xff] %v1495_v1  ;;  %v1216_v2 = vpop.f32.mrf.mxu1 }
 0x1b7   : > { %v1176_v10 = vpop.f32.mrf.mxu0  ;;  %1263 = vst [vmem:[%s2379_s15 + $0x40] sm:$0xff] %v1216_v2 }
 0x1b8   : > { %1255 = vst [vmem:[%s2379_s15] sm:$0xff] %v1176_v10 }
 0x1f4   : > { %v1498_v7 = vpop.f32.mrf.mxu0  ;;  %v1510_v15 = vpop.f32.mrf.mxu1 }
 0x1f5   : > { %1258 = vst [vmem:[%s2379_s15 + $0x18] sm:$0xff] %v1498_v7  ;;  %1266 = vst [vmem:[%s2379_s15 + $0x58] sm:$0xff] %v1510_v15 }
 0x1f6   : > { %v1186_v19 = vpop.f32.mrf.mxu0  ;;  %v1226_v21 = vpop.f32.mrf.mxu1 }
 0x1f7   : > { %1257 = vst [vmem:[%s2379_s15 + $0x10] sm:$0xff] %v1186_v19  ;;  %1265 = vst [vmem:[%s2379_s15 + $0x50] sm:$0xff] %v1226_v21 }
 0x230   : > { %v1513_v35 = vpop.f32.mrf.mxu1 }
 0x231   : > { %v1501_v37 = vpop.f32.mrf.mxu0  ;;  %1268 = vst [vmem:[%s2379_s15 + $0x68] sm:$0xff] %v1513_v35 }
 0x232   : > { %1260 = vst [vmem:[%s2379_s15 + $0x28] sm:$0xff] %v1501_v37  ;;  %v1236_v38 = vpop.f32.mrf.mxu1 }
 0x233   : > { %v1196_v16 = vpop.f32.mrf.mxu0  ;;  %1267 = vst [vmem:[%s2379_s15 + $0x60] sm:$0xff] %v1236_v38 }
 0x234   : > { %1259 = vst [vmem:[%s2379_s15 + $0x20] sm:$0xff] %v1196_v16 }
 0x24c   : > { %v1516_v39 = vpop.f32.mrf.mxu1 }
 0x24d   : > { %v1504_v50 = vpop.f32.mrf.mxu0  ;;  %1270 = vst [vmem:[%s2379_s15 + $0x78] sm:$0xff] %v1516_v39 }
 0x24e   : > { %1262 = vst [vmem:[%s2379_s15 + $0x38] sm:$0xff] %v1504_v50  ;;  %v1246_v34 = vpop.f32.mrf.mxu1 }
 0x24f   : > { %v1206_v55 = vpop.f32.mrf.mxu0  ;;  %1269 = vst [vmem:[%s2379_s15 + $0x70] sm:$0xff] %v1246_v34 }
 0x250   : > { %1261 = vst [vmem:[%s2379_s15 + $0x30] sm:$0xff] %v1206_v55 }
 0x251 PF: > { %s14_s19 = sadd.s32 1, %s1617_s19   ;;  %s2445_s15 = smov %s1609_s17 }
 0x252   : > { %p11_p10 = scmp.ge.s32.totalorder %s14_s19, 6   ;;  %s2446_s16 = smov %s1613_s18 }
 0x253   : > { %s2447_s17 = smov %s2450_s20  ;;  %s2448_s18 = smov %s2454_s21 }
 0x254   :  { %13 = sbr.rel (!%p11_p10) target bundleno = 3 (0x3), region = 72 }

</bundles_post_ra>
